<compile_context>
chip_gen: v7x
topology: tpu7x:2x2x1
jax: 0.10.0
libtpu: 0.0.40
codegen_flags: <defaults>
</compile_context>

<pallas_src>
import functools

import jax
import jax.numpy as jnp
from jax.experimental import pallas as pl
from jax.experimental.pallas import tpu as pltpu

LANES = 128
_MIB = 1024 * 1024


def _round_up(x, m):
    return (x + m - 1) // m * m


def _pick_tile(n_pad, cap):
    """Largest multiple of 128 that divides n_pad and is <= cap (>= 128)."""
    t = max(LANES, min(cap, n_pad))
    t -= t % LANES
    while n_pad % t:
        t -= LANES
    return t


def _vmem_limit(working_set_bytes):
    """Scoped-VMEM limit: enough for the working set, capped at 75% of the chip."""
    try:
        cap = pltpu.get_tpu_info().vmem_capacity_bytes
    except Exception:  # conservative default = v7x (64 MiB per TC)
        cap = 64 * _MIB
    hard_cap = int(cap * 3 // 4)
    want = max(32 * _MIB, int(working_set_bytes) + 8 * _MIB)
    return int(min(hard_cap, want))


# ---------------------------------------------------------------------------
# Kernel 1: row-tiled dense feature transform   H[i_blk] = X[i_blk] @ W
# ---------------------------------------------------------------------------
def _linear_kernel(x_ref, w_ref, o_ref):
    o_ref[...] = jnp.dot(
        x_ref[...], w_ref[...], preferred_element_type=jnp.float32
    ).astype(o_ref.dtype)


def linear_transform(x, w, *, tm):
    """x: [Np, Fp] bf16, w: [Fp, 128] bf16 -> [Np, 128] bf16."""
    n_pad, f_pad = x.shape
    p = w.shape[1]
    vmem_bytes = 2 * tm * f_pad * 2 + 2 * f_pad * p * 2 + 2 * tm * p * 2
    return pl.pallas_call(
        _linear_kernel,
        out_shape=jax.ShapeDtypeStruct((n_pad, p), jnp.bfloat16),
        grid_spec=pltpu.PrefetchScalarGridSpec(
            num_scalar_prefetch=0,
            grid=(n_pad // tm,),
            in_specs=[
                pl.BlockSpec((tm, f_pad), lambda i: (i, 0)),
                pl.BlockSpec((f_pad, p), lambda i: (0, 0)),
            ],
            out_specs=pl.BlockSpec((tm, p), lambda i: (i, 0)),
        ),
        compiler_params=pltpu.CompilerParams(
            dimension_semantics=("parallel",),
            vmem_limit_bytes=_vmem_limit(vmem_bytes),
        ),
        cost_estimate=pl.CostEstimate(
            flops=2 * n_pad * f_pad * p,
            transcendentals=0,
            bytes_accessed=n_pad * f_pad * 2 + f_pad * p * 2 + n_pad * p * 2,
        ),
    )(x, w)


# ---------------------------------------------------------------------------
# Kernel 2: tiled propagation  OUT = A_hat @ H
#   optional fused epilogues:  @ W2  (conv2 linear)   and/or masked log_softmax
# ---------------------------------------------------------------------------
def _propagate_kernel(*refs, fuse_w2, apply_log_softmax, num_classes, tk, h_resident):
    if fuse_w2:
        a_ref, h_ref, w2_ref, o_ref, acc_ref = refs
    else:
        a_ref, h_ref, o_ref, acc_ref = refs
        w2_ref = None

    k = pl.program_id(1)

    @pl.when(k == 0)
    def _():
        acc_ref[...] = jnp.zeros_like(acc_ref)

    if h_resident:
        # H lives whole in VMEM (constant block index -> fetched once); slice
        # the k-th contraction chunk out of it.
        start = pl.multiple_of(k * tk, tk)
        h_blk = h_ref[pl.ds(start, tk), :]
    else:
        h_blk = h_ref[...]

    acc_ref[...] += jnp.dot(a_ref[...], h_blk, preferred_element_type=jnp.float32)

    @pl.when(k == pl.num_programs(1) - 1)
    def _():
        acc = acc_ref[...]
        if fuse_w2:
            # conv2's linear fused here: (A_hat @ XW1) @ W2, resident (128,128) W2
            acc = jnp.dot(acc.astype(w2_ref.dtype), w2_ref[...],
                          preferred_element_type=jnp.float32)
        if apply_log_softmax:
            # normalize only over the real `num_classes` lanes, zero the padding
            cols = jax.lax.broadcasted_iota(jnp.int32, acc.shape, 1)
            valid = cols < num_classes
            masked = jnp.where(valid, acc, -jnp.inf)
            m = jnp.max(masked, axis=-1, keepdims=True)
            e = jnp.where(valid, jnp.exp(masked - m), 0.0)
            lse = jnp.log(jnp.sum(e, axis=-1, keepdims=True)) + m
            acc = jnp.where(valid, acc - lse, 0.0)
        o_ref[...] = acc.astype(o_ref.dtype)


def propagate(a, h, *, out_dtype, w2=None, apply_log_softmax=False, num_classes=0,
              tm, tk, h_resident_budget=8 * _MIB):
    """a: [Np, Np] bf16, h: [Np, 128] bf16 -> [Np, 128] out_dtype (= (A @ H) [@ W2])."""
    n_pad = a.shape[0]
    p = h.shape[1]
    out_itemsize = jnp.dtype(out_dtype).itemsize
    fuse_w2 = w2 is not None

    h_bytes = n_pad * p * h.dtype.itemsize
    h_resident = h_bytes <= h_resident_budget   # [N,128] bf16 -> resident up to ~32k nodes

    vmem_bytes = (
        2 * tm * tk * 2                                     # double-buffered bf16 A tiles
        + (2 * h_bytes if h_resident else 2 * tk * p * 2)   # resident H (x2 safety) or streamed tiles
        + (2 * p * p * 2 if fuse_w2 else 0)                 # resident W2
        + 2 * tm * p * out_itemsize                         # output tiles
        + tm * p * 4                                        # f32 accumulator scratch
    )

    in_specs = [pl.BlockSpec((tm, tk), lambda i, k: (i, k))]
    if h_resident:
        in_specs.append(pl.BlockSpec((n_pad, p), lambda i, k: (0, 0)))
    else:
        in_specs.append(pl.BlockSpec((tk, p), lambda i, k: (k, 0)))
    operands = [a, h]
    if fuse_w2:
        in_specs.append(pl.BlockSpec((p, p), lambda i, k: (0, 0)))
        operands.append(w2)

    kernel = functools.partial(
        _propagate_kernel,
        fuse_w2=fuse_w2,
        apply_log_softmax=apply_log_softmax,
        num_classes=num_classes,
        tk=tk,
        h_resident=h_resident,
    )

    flops = 2 * n_pad * n_pad * p + (2 * n_pad * p * p if fuse_w2 else 0)
    bytes_accessed = (n_pad * n_pad * 2 + h_bytes + n_pad * p * out_itemsize
                      + (p * p * 2 if fuse_w2 else 0))

    # TODO(synk): for sparse real-world graphs, add a scalar-prefetched
    # per-(i,k) nonzero-tile map and skip all-zero A tiles (block-sparse A).
    return pl.pallas_call(
        kernel,
        out_shape=jax.ShapeDtypeStruct((n_pad, p), out_dtype),
        grid_spec=pltpu.PrefetchScalarGridSpec(
            num_scalar_prefetch=0,
            grid=(n_pad // tm, n_pad // tk),
            in_specs=in_specs,
            out_specs=pl.BlockSpec((tm, p), lambda i, k: (i, 0)),
            scratch_shapes=[pltpu.VMEM((tm, p), jnp.float32)],
        ),
        compiler_params=pltpu.CompilerParams(
            dimension_semantics=("parallel", "arbitrary"),
            vmem_limit_bytes=_vmem_limit(vmem_bytes),
        ),
        cost_estimate=pl.CostEstimate(
            flops=flops,
            transcendentals=(n_pad * p) if apply_log_softmax else 0,
            bytes_accessed=bytes_accessed,
        ),
    )(*operands)


# ---------------------------------------------------------------------------
# SGCNet forward (eval mode)
# ---------------------------------------------------------------------------
def sgc_net_forward(a_hat, x, w1, w2, *, tm_cap=512, tk_cap=2048):
    n, f = x.shape
    hidden = w1.shape[1]
    c = w2.shape[1]
    assert a_hat.shape == (n, n) and w1.shape == (f, hidden) and w2.shape == (hidden, c)
    assert hidden <= LANES and c <= LANES

    bf16 = jnp.bfloat16

    # pad N / F to lane granularity (128), NOT to the tile size (no quadratic waste)
    n_pad = _round_up(n, LANES)
    f_pad = _round_up(f, LANES)

    # A tiles: multiples of 128 that divide n_pad; large tk amortizes per-step overhead
    tm = _pick_tile(n_pad, tm_cap)
    tk = _pick_tile(n_pad, tk_cap)
    # keep >= 2 row tiles where possible so the "parallel" axis shards across 2 TCs (v7x)
    if n_pad // tm < 2 and n_pad > LANES:
        tm = _pick_tile(n_pad, n_pad // 2)

    # zero-pad (zero rows/cols contribute nothing to any of the matmuls)
    a_pad = jnp.zeros((n_pad, n_pad), bf16).at[:n, :n].set(a_hat.astype(bf16))
    x_pad = jnp.zeros((n_pad, f_pad), bf16).at[:n, :f].set(x.astype(bf16))
    w1_pad = jnp.zeros((f_pad, LANES), bf16).at[:f, :hidden].set(w1.astype(bf16))
    w2_pad = jnp.zeros((LANES, LANES), bf16).at[:hidden, :c].set(w2.astype(bf16))

    # conv1 linear: XW1 = X @ W1   (propagation then runs lane-dense at width 128)
    xw1 = linear_transform(x_pad, w1_pad, tm=tm)

    # conv1 propagation fused with conv2's linear: H = (A_hat @ XW1) @ W2
    # F.dropout(x, training=False) between them is the identity (eval mode).
    # TODO(synk): implement training-mode dropout with pltpu.prng_random_bits if needed.
    h1w2 = propagate(a_pad, xw1, w2=w2_pad, out_dtype=bf16, tm=tm, tk=tk)

    # conv2 propagation + fused masked log_softmax: out = log_softmax(A_hat @ H)
    out = propagate(a_pad, h1w2, out_dtype=jnp.float32,
                    apply_log_softmax=True, num_classes=c, tm=tm, tk=tk)
    return out[:n, :c]


# ---------------------------------------------------------------------------
# JAX glue: dense normalized adjacency (matches SGConv's gcn_norm, self loops)
# ---------------------------------------------------------------------------
def build_normalized_adjacency(edge_index, edge_weight, num_nodes):
    src, dst = edge_index[0], edge_index[1]
    loop = jnp.arange(num_nodes, dtype=src.dtype)
    src = jnp.concatenate([src, loop])
    dst = jnp.concatenate([dst, loop])
    w = jnp.concatenate([edge_weight, jnp.ones((num_nodes,), jnp.float32)])

    deg = jnp.zeros((num_nodes,), jnp.float32).at[dst].add(w)
    dinv = jnp.where(deg > 0, 1.0 / jnp.sqrt(deg), 0.0)
    norm = dinv[dst] * w * dinv[src]

    a = jnp.zeros((num_nodes, num_nodes), jnp.float32)
    a = a.at[dst, src].add(norm)  # out[i] = sum_j A[i, j] * x[j]
    return a


def glorot(key, shape):
    fan_in, fan_out = shape
    limit = jnp.sqrt(6.0 / (fan_in + fan_out))
    return jax.random.uniform(key, shape, jnp.float32, -limit, limit)


if __name__ == "__main__":
    key = jax.random.PRNGKey(0)
    k_x, k_w1, k_w2, k_w = jax.random.split(key, 4)

    num_nodes = 16
    num_feats = 8
    hidden = 16          # fixed by SGCNet.__init__
    num_classes = 4

    # node features
    x = jax.random.normal(k_x, (num_nodes, num_feats), jnp.float32)

    # simple deterministic ring graph (both directions)
    fwd = jnp.stack([jnp.arange(num_nodes), (jnp.arange(num_nodes) + 1) % num_nodes])
    bwd = jnp.stack([(jnp.arange(num_nodes) + 1) % num_nodes, jnp.arange(num_nodes)])
    edge_index = jnp.concatenate([fwd, bwd], axis=1).astype(jnp.int32)
    edge_weight = jax.random.uniform(k_w, (edge_index.shape[1],), jnp.float32, 0.5, 1.5)

    # deterministic parameter init (glorot, like PyG Linear), bias=False
    w1 = glorot(k_w1, (num_feats, hidden))
    w2 = glorot(k_w2, (hidden, num_classes))

    a_hat = build_normalized_adjacency(edge_index, edge_weight, num_nodes)

    out = sgc_net_forward(a_hat, x, w1, w2)
    out = jax.block_until_ready(out)

    # reference in plain JAX following the same bf16-operand / f32-accumulate path
    bf = jnp.bfloat16
    xw1_r = jnp.dot(x.astype(bf), w1.astype(bf), preferred_element_type=jnp.float32).astype(bf)
    h1_r = jnp.dot(a_hat.astype(bf), xw1_r, preferred_element_type=jnp.float32)
    h1w2_r = jnp.dot(h1_r.astype(bf), w2.astype(bf), preferred_element_type=jnp.float32).astype(bf)
    logits_r = jnp.dot(a_hat.astype(bf), h1w2_r, preferred_element_type=jnp.float32)
    ref = jax.nn.log_softmax(logits_r, axis=-1)

    assert out.shape == (num_nodes, num_classes)
    assert jnp.allclose(out, ref, atol=5e-3, rtol=5e-3), "mismatch vs reference"

    print("KERNEL_OK")
</pallas_src>

<mosaic_0001>
module attributes {stable_mosaic.version = 11 : i64} {
  func.func @_linear_kernel(%arg0: i32, %arg1: memref<128x128xbf16, #tpu.memory_space<vmem>>, %arg2: memref<128x128xbf16, #tpu.memory_space<vmem>>, %arg3: memref<128x128xbf16, #tpu.memory_space<vmem>>) attributes {dimension_semantics = [#tpu.dimension_semantics<parallel>], iteration_bounds = array<i64: 1>, scalar_prefetch = 0 : i64, scratch_operands = 0 : i64, tpu.core_type = #tpu.core_type<tc>, window_params = [{transform_indices = @transform_0, window_bounds = array<i64: 128, 128>}, {pipeline_mode = #tpu.pipeline_mode<synchronous>, transform_indices = @transform_1, window_bounds = array<i64: 128, 128>}, {transform_indices = @transform_2, window_bounds = array<i64: 128, 128>}]} {
    %c0 = arith.constant 0 : index
    %c0_0 = arith.constant 0 : index
    %0 = vector.load %arg1[%c0, %c0_0] : memref<128x128xbf16, #tpu.memory_space<vmem>>, vector<128x128xbf16>
    %c0_1 = arith.constant 0 : index
    %c0_2 = arith.constant 0 : index
    %1 = vector.load %arg2[%c0_1, %c0_2] : memref<128x128xbf16, #tpu.memory_space<vmem>>, vector<128x128xbf16>
    %cst = arith.constant dense<0.000000e+00> : vector<128x128xf32>
    %2 = tpu.matmul %0, %1, %cst {dimension_numbers = #tpu.dot_dimension_numbers<[1], [0], [0], [1], [0, 0, 1, 1], [], []>} : vector<128x128xbf16>, vector<128x128xbf16>, vector<128x128xf32> -> vector<128x128xf32>
    %3 = arith.truncf %2 : vector<128x128xf32> to vector<128x128xbf16>
    %c0_3 = arith.constant 0 : index
    %c0_4 = arith.constant 0 : index
    %4 = vector.load %arg3[%c0_3, %c0_4] : memref<128x128xbf16, #tpu.memory_space<vmem>>, vector<128x128xbf16>
    tpu.vector_store %arg3[%c0_3, %c0_4], %3 {strides = array<i32>} : memref<128x128xbf16, #tpu.memory_space<vmem>>, vector<128x128xbf16>,
    return
  }
  func.func @transform_0(%arg0: i32) -> (i32, i32) {
    %c0_i32 = arith.constant 0 : i32
    %c0_i32_0 = arith.constant 0 : i32
    return %arg0, %c0_i32 : i32, i32
  }
  func.func @transform_1(%arg0: i32) -> (i32, i32) {
    %c0_i32 = arith.constant 0 : i32
    %c0_i32_0 = arith.constant 0 : i32
    %c0_i32_1 = arith.constant 0 : i32
    return %c0_i32, %c0_i32_0 : i32, i32
  }
  func.func @transform_2(%arg0: i32) -> (i32, i32) {
    %c0_i32 = arith.constant 0 : i32
    %c0_i32_0 = arith.constant 0 : i32
    return %arg0, %c0_i32 : i32, i32
  }
}

</mosaic_0001>

<bundles_post_ra>
// kernel: tpu_custom_call.1
= control target key start
LH: loop header
LB: loop body
LE: loop exit
PB: predicated region body
PF: predicated region fallthrough
CT: control target
= control target key end

     0   :  { %7 = vsyncpa [#allocation3], 0  ;;  %s681_s0 = inlined_call_operand.hbm [shape: bf16[128,128], index: 0, kind: input, shape index: {}]   ;;  %s682_s1 = inlined_call_operand.hbm [shape: bf16[128,128], index: 1, kind: input, shape index: {}]   ;;  %s683_s2 = inlined_call_operand.hbm [shape: bf16[128,128], index: 2, kind: output, shape index: {}]  }
   0x1   :  { %8 = vsyncpa [#allocation6], 0 }
   0x2   :  { %9 = vsyncpa [#allocation4], 0  ;;  %s616_s9 = smov [#allocation2]   ;;  %s544_s13 = scalar_lea.hbm %s681_s0, 1024 }
   0x3   :  { %s15_s10 = sshll.u32 %s616_s9, 4  ;;  %p545_p0 = scmp.ne.s32.totalorder %s681_s0, %s544_s13  ;;  %s16_s10 = int_to_ptr.vmem [resolvable:$true] %s15_s10 }
   0x4   :  { %p548_p1 = scmp.lt.u32.totalorder %s544_s13, %s681_s0 }
   0x6   :  { %p550_p2 = pnand %p548_p1, %p545_p0 }
   0x8   :  { %553 = shalt.err (!%p550_p2)
}
   0x9   :  { %s554_s18 = scalar_lea.vmem %s16_s10, 1024  ;;  %p559_p4 = scmp.lt.s32.totalorder %s16_s10, %s16_s10 }
   0xa   :  { %p555_p3 = scmp.ne.s32.totalorder %s16_s10, %s554_s18  ;;  %p560_p5 = scmp.lt.s32.totalorder %s554_s18, %s554_s18 }
   0xc   :  { %p561_p6 = por %p560_p5, %p559_p4 }
   0xe   :  { %p562_p7 = pnand %p561_p6, %p555_p3 }
  0x10   :  { %565 = shalt.err (!%p562_p7)
}
  0x11   :  { %s617_s19 = smov 64   ;;  %s618_s20 = smov 4  }
  0x12   :  { %21 = dma.hbm_to_vmem [thread:$0]  %s681_s0, 1024, %s16_s10, [#allocation3], %s617_s19, %s617_s19, %s618_s20  }
  0x13   :  { %s619_s23 = smov [#allocation5]   ;;  %s566_s27 = scalar_lea.hbm %s682_s1, 1024 }
  0x14   :  { %s27_s24 = sshll.u32 %s619_s23, 4  ;;  %p567_p8 = scmp.ne.s32.totalorder %s682_s1, %s566_s27  ;;  %s28_s24 = int_to_ptr.vmem [resolvable:$true] %s27_s24 }
  0x15   :  { %p570_p9 = scmp.lt.u32.totalorder %s566_s27, %s682_s1 }
  0x17   :  { %p572_p10 = pnand %p570_p9, %p567_p8 }
  0x19   :  { %575 = shalt.err (!%p572_p10)
}
  0x1a   :  { %s576_s4 = scalar_lea.vmem %s28_s24, 1024  ;;  %p581_p12 = scmp.lt.s32.totalorder %s28_s24, %s28_s24 }
  0x1b   :  { %p577_p11 = scmp.ne.s32.totalorder %s28_s24, %s576_s4  ;;  %p582_p13 = scmp.lt.s32.totalorder %s576_s4, %s576_s4 }
  0x1d   :  { %p583_p0 = por %p582_p13, %p581_p12 }
  0x1f   :  { %p584_p1 = pnand %p583_p0, %p577_p11 }
  0x21   :  { %587 = shalt.err (!%p584_p1)
}
  0x22   :  { %33 = dma.hbm_to_vmem [thread:$0]  %s682_s1, 1024, %s28_s24, [#allocation6], %s617_s19, %s617_s19, %s618_s20  }
  0x23   :  { %610 = dma.done.wait [#allocation3], 1024  }
  0x24   :  { %611 = vsyncadd [#allocation3], 4294966272 }
  0x25   :  { %612 = dma.done.wait [#allocation6], 1024  }
  0x26   :  { %613 = vsyncadd [#allocation6], 4294966272  ;;  %v528_v0 = vld [vmem:[#allocation5] sm:$0xff]   ;;  %v529_v1 = vld [vmem:[#allocation5 + $0x8] sm:$0xff]   ;;  %s620_s1 = smov [#allocation7]  }
  0x27   :  { %475 = vmatprep.subr.bf16.mxu0 %v528_v0  ;;  %507 = vmatprep.subr.bf16.mxu1 %v528_v0  ;;  %v530_v2 = vld [vmem:[#allocation5 + $0x10] sm:$0xff]   ;;  %v531_v3 = vld [vmem:[#allocation5 + $0x18] sm:$0xff]   ;;  %v536_v4 = vld [vmem:[#allocation2] sm:$0xff]   ;;  %s351_s6 = sshll.u32 %s620_s1, 4  ;;  %s352_s6 = int_to_ptr.vmem [resolvable:$true] %s351_s6 }
  0x28   :  { %476 = vmatpush3.bf16.msra.mxu0 %v528_v0  ;;  %515 = vmatpush3.bf16.msra.mxu1 %v528_v0  ;;  %v537_v5 = vld [vmem:[#allocation2 + $0x20] sm:$0xff]   ;;  %v533_v7 = vld [vmem:[#allocation5 + $0x28] sm:$0xff]   ;;  %v534_v8 = vld [vmem:[#allocation5 + $0x30] sm:$0xff]   ;;  %s588_s7 = scalar_lea.vmem %s352_s6, 1024  ;;  %p593_p3 = scmp.lt.s32.totalorder %s352_s6, %s352_s6 }
  0x29   :  { %477 = vmatprep.subr.bf16.mxu0 %v529_v1  ;;  %508 = vmatprep.subr.bf16.mxu1 %v529_v1  ;;  %v532_v6 = vld [vmem:[#allocation5 + $0x20] sm:$0xff]   ;;  %v535_v9 = vld [vmem:[#allocation5 + $0x38] sm:$0xff]   ;;  %v538_v10 = vld [vmem:[#allocation2 + $0x8] sm:$0xff]   ;;  %p589_p2 = scmp.ne.s32.totalorder %s352_s6, %s588_s7  ;;  %p594_p4 = scmp.lt.s32.totalorder %s588_s7, %s588_s7 }
  0x2a   :  { %491 = vmatprep.mubr.bf16.mxu0 %v536_v4  ;;  %499 = vmatprep.mubr.bf16.mxu1 %v537_v5  ;;  %v539_v11 = vld [vmem:[#allocation2 + $0x28] sm:$0xff]   ;;  %v540_v12 = vld [vmem:[#allocation2 + $0x10] sm:$0xff]   ;;  %v542_v14 = vld [vmem:[#allocation2 + $0x18] sm:$0xff]  }
  0x2b   :  { %v541_v13 = vld [vmem:[#allocation2 + $0x30] sm:$0xff]   ;;  %v543_v15 = vld [vmem:[#allocation2 + $0x38] sm:$0xff]   ;;  %p595_p5 = por %p594_p4, %p593_p3 }
  0x2c   :  { %478 = vmatpush3.bf16.msra.mxu0 %v529_v1  ;;  %516 = vmatpush3.bf16.msra.mxu1 %v529_v1 }
  0x2d   :  { %479 = vmatprep.subr.bf16.mxu0 %v530_v2  ;;  %509 = vmatprep.subr.bf16.mxu1 %v530_v2  ;;  %p596_p6 = pnand %p595_p5, %p589_p2 }
  0x30   :  { %480 = vmatpush3.bf16.msra.mxu0 %v530_v2  ;;  %517 = vmatpush3.bf16.msra.mxu1 %v530_v2 }
  0x31   :  { %481 = vmatprep.subr.bf16.mxu0 %v531_v3  ;;  %510 = vmatprep.subr.bf16.mxu1 %v531_v3 }
  0x34   :  { %482 = vmatpush3.bf16.msra.mxu0 %v531_v3  ;;  %518 = vmatpush3.bf16.msra.mxu1 %v531_v3 }
  0x35   :  { %483 = vmatprep.subr.bf16.mxu0 %v532_v6  ;;  %511 = vmatprep.subr.bf16.mxu1 %v532_v6 }
  0x38   :  { %484 = vmatpush3.bf16.msra.mxu0 %v532_v6  ;;  %519 = vmatpush3.bf16.msra.mxu1 %v532_v6 }
  0x39   :  { %485 = vmatprep.subr.bf16.mxu0 %v533_v7  ;;  %512 = vmatprep.subr.bf16.mxu1 %v533_v7 }
  0x3c   :  { %486 = vmatpush3.bf16.msra.mxu0 %v533_v7  ;;  %520 = vmatpush3.bf16.msra.mxu1 %v533_v7 }
  0x3d   :  { %487 = vmatprep.subr.bf16.mxu0 %v534_v8  ;;  %513 = vmatprep.subr.bf16.mxu1 %v534_v8 }
  0x40   :  { %488 = vmatpush3.bf16.msra.mxu0 %v534_v8  ;;  %521 = vmatpush3.bf16.msra.mxu1 %v534_v8 }
  0x41   :  { %489 = vmatprep.subr.bf16.mxu0 %v535_v9  ;;  %514 = vmatprep.subr.bf16.mxu1 %v535_v9 }
  0x44   :  { %490 = vmatpush3.bf16.msra.mxu0 %v535_v9  ;;  %522 = vmatpush3.bf16.msra.mxu1 %v535_v9 }
  0x47   :  { %492 = vmatmul.mubr.bf16.vlgmr.msra.gmra.mrb[0].mxu0 %v538_v10  ;;  %500 = vmatmul.mubr.bf16.vlgmr.msra.gmra.mrb[0].mxu1 %v539_v11 }
  0x48   :  { %495 = vmatprep.mubr.bf16.mxu0 %v540_v12  ;;  %503 = vmatprep.mubr.bf16.mxu1 %v541_v13 }
  0x4f   :  { %496 = vmatmul.mubr.bf16.gmra.mrb[4].mxu0 %v542_v14  ;;  %504 = vmatmul.mubr.bf16.gmra.mrb[4].mxu1 %v543_v15 }
 0x11a   :  { %v493_v16 = vpop.f32.mrb[0].mxu0  ;;  %v501_v17 = vpop.f32.mrb[0].mxu1 }
 0x11b   :  { %v203_v18 = vpop.f32.mrb[1].mxu0  ;;  %v235_v19 = vpop.f32.mrb[1].mxu1 }
 0x11c   :  { %v494_v20 = vpop.f32.mrb[2].mxu0  ;;  %v502_v21 = vpop.f32.mrb[2].mxu1 }
 0x11d   :  { %v420_v22 = vpack.c.bf16 %v494_v20, %v493_v16  ;;  %v440_v23 = vpack.c.bf16 %v502_v21, %v501_v17  ;;  %v206_v24 = vpop.f32.mrb[3].mxu0  ;;  %v238_v25 = vpop.f32.mrb[3].mxu1 }
 0x11e   :  { %v415_v26 = vpack.c.bf16 %v206_v24, %v203_v18  ;;  %v435_v27 = vpack.c.bf16 %v238_v25, %v235_v19 }
 0x11f   :  { %452 = vst [vmem:[#allocation7 + $0x8] sm:$0xff] %v420_v22   ;;  %456 = vst [vmem:[#allocation7 + $0x28] sm:$0xff] %v440_v23  }
 0x120   :  { %416 = vst [vmem:[#allocation7] sm:$0xff] %v415_v26   ;;  %455 = vst [vmem:[#allocation7 + $0x20] sm:$0xff] %v435_v27  }
 0x122   :  { %v497_v28 = vpop.f32.mrb[4].mxu0  ;;  %v505_v29 = vpop.f32.mrb[4].mxu1 }
 0x123   :  { %v219_v30 = vpop.f32.mrb[5].mxu0  ;;  %v251_v31 = vpop.f32.mrb[5].mxu1 }
 0x124   :  { %v498_v32 = vpop.f32.mrb[6].mxu0  ;;  %v506_v33 = vpop.f32.mrb[6].mxu1 }
 0x125   :  { %v430_v34 = vpack.c.bf16 %v498_v32, %v497_v28  ;;  %v450_v35 = vpack.c.bf16 %v506_v33, %v505_v29  ;;  %v222_v36 = vpop.f32.mrb[7].mxu0  ;;  %v254_v37 = vpop.f32.mrb[7].mxu1 }
 0x126   :  { %v425_v38 = vpack.c.bf16 %v222_v36, %v219_v30  ;;  %v445_v39 = vpack.c.bf16 %v254_v37, %v251_v31 }
 0x127   :  { %454 = vst [vmem:[#allocation7 + $0x18] sm:$0xff] %v430_v34   ;;  %458 = vst [vmem:[#allocation7 + $0x38] sm:$0xff] %v450_v35  }
 0x128   :  { %453 = vst [vmem:[#allocation7 + $0x10] sm:$0xff] %v425_v38   ;;  %457 = vst [vmem:[#allocation7 + $0x30] sm:$0xff] %v445_v39  }
 0x129   :  { %599 = shalt.err (!%p596_p6)
}
 0x12a   :  { %s600_s10 = scalar_lea.hbm %s683_s2, 1024 }
 0x12b   :  { %p601_p7 = scmp.ne.s32.totalorder %s683_s2, %s600_s10  ;;  %p604_p8 = scmp.lt.u32.totalorder %s600_s10, %s683_s2 }
 0x12d   :  { %p606_p9 = pnand %p604_p8, %p601_p7 }
 0x12f   :  { %609 = shalt.err (!%p606_p9)
}
 0x130   :  { %357 = dma.vmem_to_hbm [thread:$0]  %s352_s6, 1024, %s683_s2, [#allocation4], %s617_s19, %s617_s19, %s618_s20  }
 0x131   :  { %614 = dma.done.wait [#allocation4], 1024  }
 0x132   :  { %615 = vsyncadd [#allocation4], 4294966272 }
 0x133   :  { %361 = vsyncpa [#allocation3], 1 }
 0x134   :  { %362 = vsyncpa [#allocation6], 1 }
 0x135   :  { %363 = vsyncpa [#allocation4], 1 }

</bundles_post_ra>
